<compile_context>
chip_gen: v7x
topology: tpu7x:2x2x1
jax: 0.10.0
libtpu: 0.0.40
codegen_flags: <defaults>
</compile_context>

<pallas_src>
import jax
import jax.numpy as jnp
from jax.experimental import pallas as pl
from jax.experimental.pallas import tpu as pltpu


_LANE = 128      # lane (last-dim) tile width
_SUBLANE = 8     # sublane (second-to-last dim) tile width


def _round_up(v, m):
    return ((v + m - 1) // m) * m


def _make_mlp_kernel(num_layers):
    """Fused MLP kernel over one batch tile.

    Ref order: x_ref, w0, b0, w1, b1, ..., w{L-1}, b{L-1}, out_ref.
    Weights/biases are VMEM-resident across the batch grid (index_map -> (0,0)).
    Matmul operands stay in their storage dtype (bf16) and accumulate in f32 on
    the MXU; bias / ReLU / sigmoid run in f32 on the VPU/EUP.
    """

    def kernel(*refs):
        x_ref = refs[0]
        out_ref = refs[-1]
        wb = refs[1:-1]

        y = x_ref[...]                                   # (tile, 128k) bf16
        for li in range(num_layers):
            w = wb[2 * li][...]                          # (in_pad, out_pad) bf16
            b = wb[2 * li + 1][...]                      # (1, out_pad) f32
            acc = jnp.dot(y, w, preferred_element_type=jnp.float32) + b
            if li < num_layers - 1:
                acc = jnp.maximum(acc, 0.0)              # F.relu (f32)
                y = acc.astype(w.dtype)                  # back to bf16 for MXU
            else:
                out_ref[...] = jax.nn.sigmoid(acc).astype(out_ref.dtype)

    return kernel


def prepare_padded_params(params, *, weight_dtype=jnp.bfloat16):
    """One-time layout prep: pad (W, b) to lane-dense shapes, cast W to bf16.

    W: (in, out) -> (round_up(in,128), round_up(out,128)) in weight_dtype
    b: (1, out)  -> (1, round_up(out,128)) kept in f32.
    Zero padding is exact: padded activation lanes stay identically zero through
    every Linear+ReLU layer; padded output lanes are sliced off in the wrapper.
    """
    padded = []
    for w, b in params:
        fi, fo = w.shape
        fi_p, fo_p = _round_up(fi, _LANE), _round_up(fo, _LANE)
        w_p = jnp.zeros((fi_p, fo_p), weight_dtype).at[:fi, :fo].set(
            w.astype(weight_dtype))
        b_p = jnp.zeros((1, fo_p), jnp.float32).at[:, :fo].set(
            b.astype(jnp.float32))
        padded.append((w_p, b_p))
    return padded


def dynamic_model_forward(x, padded_params, out_features, *, block_rows=512):
    """Run the fused MLP. x: (batch, in_features), returns (batch, out_features)."""
    num_layers = len(padded_params)
    batch, in_features = x.shape
    in_pad = padded_params[0][0].shape[0]
    out_pad = padded_params[-1][0].shape[1]
    compute_dtype = padded_params[0][0].dtype

    # Batch tiling: round batch to a sublane multiple, cap the tile, pad to a
    # whole number of tiles. Footprint per step (tile*128 activations, all
    # padded weights resident) is tiny vs even v7x's 64 MiB VMEM.
    batch_p = _round_up(batch, _SUBLANE)
    tile = min(block_rows, batch_p)
    batch_p = _round_up(batch_p, tile)
    grid = (batch_p // tile,)

    # Lane-dense, compute-dtype activations (pad batch rows + feature lanes).
    x_p = jnp.zeros((batch_p, in_pad), compute_dtype).at[:batch, :in_features].set(
        x.astype(compute_dtype))

    flat_params = []
    in_specs = [pl.BlockSpec((tile, in_pad), lambda i: (i, 0))]
    for w_p, b_p in padded_params:
        flat_params.extend([w_p, b_p])
        in_specs.append(pl.BlockSpec(w_p.shape, lambda i: (0, 0)))  # resident
        in_specs.append(pl.BlockSpec(b_p.shape, lambda i: (0, 0)))  # resident
    out_spec = pl.BlockSpec((tile, out_pad), lambda i: (i, 0))

    flops = 2 * batch_p * sum(w.shape[0] * w.shape[1] for w, _ in padded_params)
    bytes_accessed = (
        x_p.size * x_p.dtype.itemsize
        + sum(w.size * w.dtype.itemsize + b.size * b.dtype.itemsize
              for w, b in padded_params)
        + batch_p * out_pad * 4)

    y_p = pl.pallas_call(
        _make_mlp_kernel(num_layers),
        out_shape=jax.ShapeDtypeStruct((batch_p, out_pad), jnp.float32),
        grid=grid,
        in_specs=in_specs,
        out_specs=out_spec,
        compiler_params=pltpu.CompilerParams(
            dimension_semantics=("parallel",)),  # v7x: shard batch grid over 2 TCs
        cost_estimate=pl.CostEstimate(
            flops=flops,
            transcendentals=batch_p * out_pad,
            bytes_accessed=bytes_accessed),
    )(x_p, *flat_params)

    # Slice off batch padding and padded output lanes.
    return y_p[:batch, :out_features].astype(x.dtype)


def init_dynamic_model_params(key, in_in, in_out, out_out, h_ins=(), h_outs=()):
    """Deterministic init mirroring DynamicModel.__init__ layer shapes.

    PyTorch-Linear-style uniform(-1/sqrt(fan_in), 1/sqrt(fan_in)).
    Returns list of (W, b) with W: (fan_in, fan_out), b: (1, fan_out), f32.
    """
    h_ins = list(h_ins)
    h_outs = list(h_outs)

    layer_dims = [(in_in, h_ins[0] if len(h_ins) else in_out)]
    for idx in range(len(h_ins)):
        layer_dims.append((h_ins[idx], h_outs[idx]))
    layer_dims.append((h_outs[-1] if len(h_outs) else in_out, out_out))

    params = []
    for fan_in, fan_out in layer_dims:
        key, kw, kb = jax.random.split(key, 3)
        bound = 1.0 / (fan_in ** 0.5)
        w = jax.random.uniform(kw, (fan_in, fan_out), jnp.float32, -bound, bound)
        b = jax.random.uniform(kb, (1, fan_out), jnp.float32, -bound, bound)
        params.append((w, b))
    return params


def reference_forward(x, params, *, weight_dtype=jnp.bfloat16):
    """Pure-JAX reference matching the kernel numerics (bf16 matmul, f32 math)."""
    y = x.astype(weight_dtype)
    num_layers = len(params)
    for li, (w, b) in enumerate(params):
        acc = jnp.dot(y, w.astype(weight_dtype),
                      preferred_element_type=jnp.float32) + b.astype(jnp.float32)
        if li < num_layers - 1:
            y = jnp.maximum(acc, 0.0).astype(weight_dtype)
        else:
            y = jax.nn.sigmoid(acc)
    return y.astype(x.dtype)


if __name__ == "__main__":
    # DynamicModel(in_in=32, in_out=16, out_out=8, h_ins=[64, 32], h_outs=[32, 16])
    in_in, in_out, out_out = 32, 16, 8
    h_ins, h_outs = [64, 32], [32, 16]
    batch = 8

    key = jax.random.PRNGKey(0)
    key, kx = jax.random.split(key)
    x = jax.random.normal(kx, (batch, in_in), jnp.float32)

    params = init_dynamic_model_params(key, in_in, in_out, out_out, h_ins, h_outs)
    padded_params = prepare_padded_params(params)   # one-time lane-dense layout

    out = dynamic_model_forward(x, padded_params, out_out)
    out = jax.block_until_ready(out)

    ref = reference_forward(x, params)
    assert out.shape == (batch, out_out), out.shape
    max_err = float(jnp.max(jnp.abs(out.astype(jnp.float32) - ref.astype(jnp.float32))))
    assert max_err < 1e-2, max_err
    print("KERNEL_OK")
</pallas_src>

<mosaic_0001>
module attributes {stable_mosaic.version = 11 : i64} {
  func.func @kernel(%arg0: i32, %arg1: memref<8x128xbf16, #tpu.memory_space<vmem>>, %arg2: memref<128x128xbf16, #tpu.memory_space<vmem>>, %arg3: memref<1x128xf32, #tpu.memory_space<vmem>>, %arg4: memref<128x128xbf16, #tpu.memory_space<vmem>>, %arg5: memref<1x128xf32, #tpu.memory_space<vmem>>, %arg6: memref<128x128xbf16, #tpu.memory_space<vmem>>, %arg7: memref<1x128xf32, #tpu.memory_space<vmem>>, %arg8: memref<128x128xbf16, #tpu.memory_space<vmem>>, %arg9: memref<1x128xf32, #tpu.memory_space<vmem>>, %arg10: memref<8x128xf32, #tpu.memory_space<vmem>>) attributes {dimension_semantics = [#tpu.dimension_semantics<parallel>], iteration_bounds = array<i64: 1>, scalar_prefetch = 0 : i64, scratch_operands = 0 : i64, tpu.core_type = #tpu.core_type<tc>, window_params = [{transform_indices = @transform_0, window_bounds = array<i64: 8, 128>}, {pipeline_mode = #tpu.pipeline_mode<synchronous>, transform_indices = @transform_1, window_bounds = array<i64: 128, 128>}, {pipeline_mode = #tpu.pipeline_mode<synchronous>, transform_indices = @transform_2, window_bounds = array<i64: 1, 128>}, {pipeline_mode = #tpu.pipeline_mode<synchronous>, transform_indices = @transform_3, window_bounds = array<i64: 128, 128>}, {pipeline_mode = #tpu.pipeline_mode<synchronous>, transform_indices = @transform_4, window_bounds = array<i64: 1, 128>}, {pipeline_mode = #tpu.pipeline_mode<synchronous>, transform_indices = @transform_5, window_bounds = array<i64: 128, 128>}, {pipeline_mode = #tpu.pipeline_mode<synchronous>, transform_indices = @transform_6, window_bounds = array<i64: 1, 128>}, {pipeline_mode = #tpu.pipeline_mode<synchronous>, transform_indices = @transform_7, window_bounds = array<i64: 128, 128>}, {pipeline_mode = #tpu.pipeline_mode<synchronous>, transform_indices = @transform_8, window_bounds = array<i64: 1, 128>}, {transform_indices = @transform_9, window_bounds = array<i64: 8, 128>}]} {
    %c0 = arith.constant 0 : index
    %c0_0 = arith.constant 0 : index
    %0 = vector.load %arg1[%c0, %c0_0] : memref<8x128xbf16, #tpu.memory_space<vmem>>, vector<8x128xbf16>
    %c0_1 = arith.constant 0 : index
    %c0_2 = arith.constant 0 : index
    %1 = vector.load %arg2[%c0_1, %c0_2] : memref<128x128xbf16, #tpu.memory_space<vmem>>, vector<128x128xbf16>
    %c0_3 = arith.constant 0 : index
    %c0_4 = arith.constant 0 : index
    %2 = vector.load %arg3[%c0_3, %c0_4] : memref<1x128xf32, #tpu.memory_space<vmem>>, vector<1x128xf32>
    %cst = arith.constant dense<0.000000e+00> : vector<8x128xf32>
    %3 = tpu.matmul %0, %1, %cst {dimension_numbers = #tpu.dot_dimension_numbers<[1], [0], [0], [1], [0, 0, 1, 1], [], []>} : vector<8x128xbf16>, vector<128x128xbf16>, vector<8x128xf32> -> vector<8x128xf32>
    %4 = vector.broadcast %2 : vector<1x128xf32> to vector<8x128xf32>
    %5 = arith.addf %3, %4 : vector<8x128xf32>
    %cst_5 = arith.constant 0.000000e+00 : f32
    %6 = vector.broadcast %cst_5 : f32 to vector<8x128xf32>
    %7 = arith.maximumf %5, %6 : vector<8x128xf32>
    %8 = arith.truncf %7 : vector<8x128xf32> to vector<8x128xbf16>
    %c0_6 = arith.constant 0 : index
    %c0_7 = arith.constant 0 : index
    %9 = vector.load %arg4[%c0_6, %c0_7] : memref<128x128xbf16, #tpu.memory_space<vmem>>, vector<128x128xbf16>
    %c0_8 = arith.constant 0 : index
    %c0_9 = arith.constant 0 : index
    %10 = vector.load %arg5[%c0_8, %c0_9] : memref<1x128xf32, #tpu.memory_space<vmem>>, vector<1x128xf32>
    %cst_10 = arith.constant dense<0.000000e+00> : vector<8x128xf32>
    %11 = tpu.matmul %8, %9, %cst_10 {dimension_numbers = #tpu.dot_dimension_numbers<[1], [0], [0], [1], [0, 0, 1, 1], [], []>} : vector<8x128xbf16>, vector<128x128xbf16>, vector<8x128xf32> -> vector<8x128xf32>
    %12 = vector.broadcast %10 : vector<1x128xf32> to vector<8x128xf32>
    %13 = arith.addf %11, %12 : vector<8x128xf32>
    %cst_11 = arith.constant 0.000000e+00 : f32
    %14 = vector.broadcast %cst_11 : f32 to vector<8x128xf32>
    %15 = arith.maximumf %13, %14 : vector<8x128xf32>
    %16 = arith.truncf %15 : vector<8x128xf32> to vector<8x128xbf16>
    %c0_12 = arith.constant 0 : index
    %c0_13 = arith.constant 0 : index
    %17 = vector.load %arg6[%c0_12, %c0_13] : memref<128x128xbf16, #tpu.memory_space<vmem>>, vector<128x128xbf16>
    %c0_14 = arith.constant 0 : index
    %c0_15 = arith.constant 0 : index
    %18 = vector.load %arg7[%c0_14, %c0_15] : memref<1x128xf32, #tpu.memory_space<vmem>>, vector<1x128xf32>
    %cst_16 = arith.constant dense<0.000000e+00> : vector<8x128xf32>
    %19 = tpu.matmul %16, %17, %cst_16 {dimension_numbers = #tpu.dot_dimension_numbers<[1], [0], [0], [1], [0, 0, 1, 1], [], []>} : vector<8x128xbf16>, vector<128x128xbf16>, vector<8x128xf32> -> vector<8x128xf32>
    %20 = vector.broadcast %18 : vector<1x128xf32> to vector<8x128xf32>
    %21 = arith.addf %19, %20 : vector<8x128xf32>
    %cst_17 = arith.constant 0.000000e+00 : f32
    %22 = vector.broadcast %cst_17 : f32 to vector<8x128xf32>
    %23 = arith.maximumf %21, %22 : vector<8x128xf32>
    %24 = arith.truncf %23 : vector<8x128xf32> to vector<8x128xbf16>
    %c0_18 = arith.constant 0 : index
    %c0_19 = arith.constant 0 : index
    %25 = vector.load %arg8[%c0_18, %c0_19] : memref<128x128xbf16, #tpu.memory_space<vmem>>, vector<128x128xbf16>
    %c0_20 = arith.constant 0 : index
    %c0_21 = arith.constant 0 : index
    %26 = vector.load %arg9[%c0_20, %c0_21] : memref<1x128xf32, #tpu.memory_space<vmem>>, vector<1x128xf32>
    %cst_22 = arith.constant dense<0.000000e+00> : vector<8x128xf32>
    %27 = tpu.matmul %24, %25, %cst_22 {dimension_numbers = #tpu.dot_dimension_numbers<[1], [0], [0], [1], [0, 0, 1, 1], [], []>} : vector<8x128xbf16>, vector<128x128xbf16>, vector<8x128xf32> -> vector<8x128xf32>
    %28 = vector.broadcast %26 : vector<1x128xf32> to vector<8x128xf32>
    %29 = arith.addf %27, %28 : vector<8x128xf32>
    %30 = arith.negf %29 : vector<8x128xf32>
    %31 = math.exp %30 : vector<8x128xf32>
    %cst_23 = arith.constant 1.000000e+00 : f32
    %32 = vector.broadcast %cst_23 : f32 to vector<8x128xf32>
    %33 = arith.addf %32, %31 : vector<8x128xf32>
    %34 = arith.divf %32, %33 : vector<8x128xf32>
    %c0_24 = arith.constant 0 : index
    %c0_25 = arith.constant 0 : index
    %35 = vector.load %arg10[%c0_24, %c0_25] : memref<8x128xf32, #tpu.memory_space<vmem>>, vector<8x128xf32>
    tpu.vector_store %arg10[%c0_24, %c0_25], %34 {strides = array<i32>} : memref<8x128xf32, #tpu.memory_space<vmem>>, vector<8x128xf32>,
    return
  }
  func.func @transform_0(%arg0: i32) -> (i32, i32) {
    %c0_i32 = arith.constant 0 : i32
    %c0_i32_0 = arith.constant 0 : i32
    return %arg0, %c0_i32 : i32, i32
  }
  func.func @transform_1(%arg0: i32) -> (i32, i32) {
    %c0_i32 = arith.constant 0 : i32
    %c0_i32_0 = arith.constant 0 : i32
    %c0_i32_1 = arith.constant 0 : i32
    return %c0_i32, %c0_i32_0 : i32, i32
  }
  func.func @transform_2(%arg0: i32) -> (i32, i32) {
    %c0_i32 = arith.constant 0 : i32
    %c0_i32_0 = arith.constant 0 : i32
    %c0_i32_1 = arith.constant 0 : i32
    return %c0_i32, %c0_i32_0 : i32, i32
  }
  func.func @transform_3(%arg0: i32) -> (i32, i32) {
    %c0_i32 = arith.constant 0 : i32
    %c0_i32_0 = arith.constant 0 : i32
    %c0_i32_1 = arith.constant 0 : i32
    return %c0_i32, %c0_i32_0 : i32, i32
  }
  func.func @transform_4(%arg0: i32) -> (i32, i32) {
    %c0_i32 = arith.constant 0 : i32
    %c0_i32_0 = arith.constant 0 : i32
    %c0_i32_1 = arith.constant 0 : i32
    return %c0_i32, %c0_i32_0 : i32, i32
  }
  func.func @transform_5(%arg0: i32) -> (i32, i32) {
    %c0_i32 = arith.constant 0 : i32
    %c0_i32_0 = arith.constant 0 : i32
    %c0_i32_1 = arith.constant 0 : i32
    return %c0_i32, %c0_i32_0 : i32, i32
  }
  func.func @transform_6(%arg0: i32) -> (i32, i32) {
    %c0_i32 = arith.constant 0 : i32
    %c0_i32_0 = arith.constant 0 : i32
    %c0_i32_1 = arith.constant 0 : i32
    return %c0_i32, %c0_i32_0 : i32, i32
  }
  func.func @transform_7(%arg0: i32) -> (i32, i32) {
    %c0_i32 = arith.constant 0 : i32
    %c0_i32_0 = arith.constant 0 : i32
    %c0_i32_1 = arith.constant 0 : i32
    return %c0_i32, %c0_i32_0 : i32, i32
  }
  func.func @transform_8(%arg0: i32) -> (i32, i32) {
    %c0_i32 = arith.constant 0 : i32
    %c0_i32_0 = arith.constant 0 : i32
    %c0_i32_1 = arith.constant 0 : i32
    return %c0_i32, %c0_i32_0 : i32, i32
  }
  func.func @transform_9(%arg0: i32) -> (i32, i32) {
    %c0_i32 = arith.constant 0 : i32
    %c0_i32_0 = arith.constant 0 : i32
    return %arg0, %c0_i32 : i32, i32
  }
}

</mosaic_0001>

<bundles_post_ra>
// kernel: tpu_custom_call.1
= control target key start
LH: loop header
LB: loop body
LE: loop exit
PB: predicated region body
PF: predicated region fallthrough
CT: control target
= control target key end

     0   :  { %14 = vsyncpa [#allocation3], 0  ;;  %s1110_s0 = inlined_call_operand.hbm [shape: bf16[8,128], index: 0, kind: input, shape index: {}]   ;;  %s1111_s1 = inlined_call_operand.hbm [shape: bf16[128,128], index: 1, kind: input, shape index: {}]   ;;  %s1112_s2 = inlined_call_operand.vmem [shape: f32[1,128], index: 2, kind: input, shape index: {}]   ;;  %s1113_s3 = inlined_call_operand.hbm [shape: bf16[128,128], index: 3, kind: input, shape index: {}]   ;;  %s1114_s4 = inlined_call_operand.vmem [shape: f32[1,128], index: 4, kind: input, shape index: {}]   ;;  %s1115_s5 = inlined_call_operand.hbm [shape: bf16[128,128], index: 5, kind: input, shape index: {}]   ;;  %s1116_s6 = inlined_call_operand.vmem [shape: f32[1,128], index: 6, kind: input, shape index: {}]   ;;  %s1117_s7 = inlined_call_operand.hbm [shape: bf16[128,128], index: 7, kind: input, shape index: {}]   ;;  %s1118_s8 = inlined_call_operand.vmem [shape: f32[1,128], index: 8, kind: input, shape index: {}]   ;;  %s1119_s9 = inlined_call_operand.hbm [shape: f32[8,128], index: 9, kind: output, shape index: {}]  }
   0x1   :  { %15 = vsyncpa [#allocation6], 0 }
   0x2   :  { %16 = vsyncpa [#allocation9], 0 }
   0x3   :  { %17 = vsyncpa [#allocation4], 0  ;;  %s914_s30 = smov [#allocation5]   ;;  %s774_s13 = scalar_lea.hbm %s1111_s1, 1024 }
   0x4   :  { %s33_s10 = sshll.u32 %s914_s30, 4  ;;  %p775_p0 = scmp.ne.s32.totalorder %s1111_s1, %s774_s13  ;;  %s34_s10 = int_to_ptr.vmem [resolvable:$true] %s33_s10 }
   0x5   :  { %p778_p1 = scmp.lt.u32.totalorder %s774_s13, %s1111_s1 }
   0x7   :  { %p780_p2 = pnand %p778_p1, %p775_p0 }
   0x9   :  { %783 = shalt.err (!%p780_p2)
}
   0xa   :  { %s784_s18 = scalar_lea.vmem %s34_s10, 1024  ;;  %p789_p4 = scmp.lt.s32.totalorder %s34_s10, %s34_s10 }
   0xb   :  { %p785_p3 = scmp.ne.s32.totalorder %s34_s10, %s784_s18  ;;  %p790_p5 = scmp.lt.s32.totalorder %s784_s18, %s784_s18 }
   0xd   :  { %p791_p6 = por %p790_p5, %p789_p4 }
   0xf   :  { %p792_p7 = pnand %p791_p6, %p785_p3 }
  0x11   :  { %795 = shalt.err (!%p792_p7)
}
  0x12   :  { %s915_s19 = smov 64   ;;  %s916_s20 = smov 4  }
  0x13   :  { %39 = dma.hbm_to_vmem [thread:$0]  %s1111_s1, 1024, %s34_s10, [#allocation6], %s915_s19, %s915_s19, %s916_s20  }
  0x14   :  { %s917_s23 = smov [#allocation8]   ;;  %s918_s25 = smov [#allocation2]  }
  0x15   :  { %s61_s24 = sshll.u32 %s917_s23, 4  ;;  %s24_s26 = sshll.u32 %s918_s25, 4  ;;  %s62_s24 = int_to_ptr.vmem [resolvable:$true] %s61_s24  ;;  %s25_s26 = int_to_ptr.vmem [resolvable:$true] %s24_s26 }
  0x16   :  { %s796_s29 = scalar_lea.hbm %s1115_s5, 1024 }
  0x17   :  { %p797_p8 = scmp.ne.s32.totalorder %s1115_s5, %s796_s29  ;;  %p800_p9 = scmp.lt.u32.totalorder %s796_s29, %s1115_s5 }
  0x19   :  { %p802_p10 = pnand %p800_p9, %p797_p8 }
  0x1b   :  { %805 = shalt.err (!%p802_p10)
}
  0x1c   :  { %s806_s1 = scalar_lea.vmem %s62_s24, 1024  ;;  %p811_p12 = scmp.lt.s32.totalorder %s62_s24, %s62_s24 }
  0x1d   :  { %p807_p11 = scmp.ne.s32.totalorder %s62_s24, %s806_s1  ;;  %p812_p13 = scmp.lt.s32.totalorder %s806_s1, %s806_s1 }
  0x1f   :  { %p813_p0 = por %p812_p13, %p811_p12 }
  0x21   :  { %p814_p1 = pnand %p813_p0, %p807_p11 }
  0x23   :  { %817 = shalt.err (!%p814_p1)
}
  0x24   :  { %67 = dma.hbm_to_vmem [thread:$0]  %s1115_s5, 1024, %s62_s24, [#allocation9], %s915_s19, %s915_s19, %s916_s20  }
  0x25   :  { %s818_s17 = scalar_lea.hbm %s1110_s0, 64 }
  0x26   :  { %p819_p2 = scmp.ne.s32.totalorder %s1110_s0, %s818_s17  ;;  %p822_p3 = scmp.lt.u32.totalorder %s818_s17, %s1110_s0 }
  0x28   :  { %p824_p4 = pnand %p822_p3, %p819_p2 }
  0x2a   :  { %827 = shalt.err (!%p824_p4)
}
  0x2b   :  { %s828_s25 = scalar_lea.vmem %s25_s26, 64  ;;  %p833_p6 = scmp.lt.s32.totalorder %s25_s26, %s25_s26 }
  0x2c   :  { %p829_p5 = scmp.ne.s32.totalorder %s25_s26, %s828_s25  ;;  %p834_p7 = scmp.lt.s32.totalorder %s828_s25, %s828_s25 }
  0x2e   :  { %p835_p8 = por %p834_p7, %p833_p6 }
  0x30   :  { %p836_p9 = pnand %p835_p8, %p829_p5 }
  0x32   :  { %839 = shalt.err (!%p836_p9)
}
  0x33   :  { %27 = dma.hbm_to_vmem [thread:$0]  %s1110_s0, 64, %s25_s26, [#allocation3]  }
  0x34   :  { %s919_s27 = smov [#allocation7]   ;;  %s920_s29 = smov [#allocation10]  }
  0x35   :  { %s47_s28 = sshll.u32 %s919_s27, 4  ;;  %s75_s30 = sshll.u32 %s920_s29, 4  ;;  %s48_s28 = int_to_ptr.vmem [resolvable:$true] %s47_s28  ;;  %s76_s30 = int_to_ptr.vmem [resolvable:$true] %s75_s30 }
  0x36   :  { %s840_s13 = scalar_lea.hbm %s1113_s3, 1024 }
  0x37   :  { %p841_p10 = scmp.ne.s32.totalorder %s1113_s3, %s840_s13  ;;  %p844_p11 = scmp.lt.u32.totalorder %s840_s13, %s1113_s3 }
  0x39   :  { %p846_p12 = pnand %p844_p11, %p841_p10 }
  0x3b   :  { %849 = shalt.err (!%p846_p12)
}
  0x3c   :  { %s850_s0 = scalar_lea.vmem %s48_s28, 1024  ;;  %p855_p0 = scmp.lt.s32.totalorder %s48_s28, %s48_s28 }
  0x3d   :  { %p851_p13 = scmp.ne.s32.totalorder %s48_s28, %s850_s0  ;;  %p856_p1 = scmp.lt.s32.totalorder %s850_s0, %s850_s0 }
  0x3f   :  { %p857_p2 = por %p856_p1, %p855_p0 }
  0x41   :  { %p858_p3 = pnand %p857_p2, %p851_p13 }
  0x43   :  { %861 = shalt.err (!%p858_p3)
}
  0x44   :  { %53 = dma.hbm_to_vmem [thread:$0]  %s1113_s3, 1024, %s48_s28, [#allocation6], %s915_s19, %s915_s19, %s916_s20  }
  0x45   :  { %s862_s21 = scalar_lea.hbm %s1117_s7, 1024 }
  0x46   :  { %p863_p4 = scmp.ne.s32.totalorder %s1117_s7, %s862_s21  ;;  %p866_p5 = scmp.lt.u32.totalorder %s862_s21, %s1117_s7 }
  0x48   :  { %p868_p6 = pnand %p866_p5, %p863_p4 }
  0x4a   :  { %871 = shalt.err (!%p868_p6)
}
  0x4b   :  { %s872_s24 = scalar_lea.vmem %s76_s30, 1024  ;;  %p877_p8 = scmp.lt.s32.totalorder %s76_s30, %s76_s30 }
  0x4c   :  { %p873_p7 = scmp.ne.s32.totalorder %s76_s30, %s872_s24  ;;  %p878_p9 = scmp.lt.s32.totalorder %s872_s24, %s872_s24 }
  0x4e   :  { %p879_p10 = por %p878_p9, %p877_p8 }
  0x50   :  { %p880_p11 = pnand %p879_p10, %p873_p7 }
  0x52   :  { %883 = shalt.err (!%p880_p11)
}
  0x53   :  { %81 = dma.hbm_to_vmem [thread:$0]  %s1117_s7, 1024, %s76_s30, [#allocation9], %s915_s19, %s915_s19, %s916_s20  }
  0x54   :  { %906 = dma.done.wait [#allocation3], 64  }
  0x55   :  { %907 = vsyncadd [#allocation3], 4294967232 }
  0x56   :  { %908 = dma.done.wait [#allocation6], 2048  }
  0x57   :  { %909 = vsyncadd [#allocation6], 4294965248 }
  0x58   :  { %910 = dma.done.wait [#allocation9], 2048  }
  0x59   :  { %911 = vsyncadd [#allocation9], 4294965248  ;;  %v921_v0 = vmov 0.0   ;;  %vm922_vm0 = vmmov 0   ;;  %v738_v1 = vld [vmem:[#allocation5] sm:$0xff]   ;;  %v739_v2 = vld [vmem:[#allocation5 + $0x8] sm:$0xff]  }
  0x5a   :  { %648 = vmatprep.subr.bf16.mxu0 %v921_v0  ;;  %664 = vmatprep.mubr.msk.bf16.mxu0 %vm922_vm0, %v921_v0  ;;  %v740_v3 = vld [vmem:[#allocation5 + $0x10] sm:$0xff]   ;;  %v746_v4 = vld [vmem:[#allocation7] sm:$0xff]   ;;  %v741_v5 = vld [vmem:[#allocation5 + $0x18] sm:$0xff]  }
  0x5b   :  { %668 = vmatprep.subr.bf16.mxu1 %v921_v0  ;;  %684 = vmatprep.mubr.msk.bf16.mxu1 %vm922_vm0, %v921_v0  ;;  %v747_v6 = vld [vmem:[#allocation7 + $0x8] sm:$0xff]   ;;  %v742_v7 = vld [vmem:[#allocation5 + $0x20] sm:$0xff]   ;;  %v748_v8 = vld [vmem:[#allocation7 + $0x10] sm:$0xff]  }
  0x5c   :  { %649 = vmatpush3.bf16.msra.mxu0 %v738_v1  ;;  %669 = vmatpush3.bf16.msra.mxu1 %v746_v4  ;;  %v743_v9 = vld [vmem:[#allocation5 + $0x28] sm:$0xff]   ;;  %v749_v10 = vld [vmem:[#allocation7 + $0x18] sm:$0xff]   ;;  %v744_v11 = vld [vmem:[#allocation5 + $0x30] sm:$0xff]  }
  0x5d   :  { %650 = vmatprep.subr.bf16.mxu0 %v921_v0  ;;  %670 = vmatprep.subr.bf16.mxu1 %v921_v0  ;;  %v750_v12 = vld [vmem:[#allocation7 + $0x20] sm:$0xff]   ;;  %v745_v13 = vld [vmem:[#allocation5 + $0x38] sm:$0xff]   ;;  %v751_v14 = vld [vmem:[#allocation7 + $0x28] sm:$0xff]  }
  0x5e   :  { %v100_v15 = vld [vmem:[#allocation2] sm:$0xf]  ;;  %v752_v16 = vld [vmem:[#allocation7 + $0x30] sm:$0xff]   ;;  %v754_v18 = vld [vmem:[#allocation8] sm:$0xff]  }
  0x5f   :  { %v753_v17 = vld [vmem:[#allocation7 + $0x38] sm:$0xff]   ;;  %v755_v19 = vld [vmem:[#allocation8 + $0x8] sm:$0xff]   ;;  %v756_v20 = vld [vmem:[#allocation8 + $0x10] sm:$0xff]  }
  0x60   :  { %651 = vmatpush3.bf16.msra.mxu0 %v739_v2  ;;  %671 = vmatpush3.bf16.msra.mxu1 %v747_v6  ;;  %v757_v21 = vld [vmem:[#allocation8 + $0x18] sm:$0xff]   ;;  %v758_v22 = vld [vmem:[#allocation8 + $0x20] sm:$0xff]   ;;  %v759_v23 = vld [vmem:[#allocation8 + $0x28] sm:$0xff]  }
  0x61   :  { %652 = vmatprep.subr.bf16.mxu0 %v921_v0  ;;  %672 = vmatprep.subr.bf16.mxu1 %v921_v0  ;;  %v575_v24 = vld [vmem:[%s1112_s2] ss:$0 sm:$0xff]  ;;  %v760_v32 = vld [vmem:[#allocation8 + $0x30] sm:$0xff]   ;;  %v762_v34 = vld [vmem:[#allocation10] sm:$0xff]  }
  0x62   :  { %v761_v33 = vld [vmem:[#allocation8 + $0x38] sm:$0xff]   ;;  %v763_v35 = vld [vmem:[#allocation10 + $0x8] sm:$0xff]   ;;  %v764_v36 = vld [vmem:[#allocation10 + $0x10] sm:$0xff]  }
  0x63   :  { %v765_v37 = vld [vmem:[#allocation10 + $0x18] sm:$0xff]   ;;  %v766_v38 = vld [vmem:[#allocation10 + $0x20] sm:$0xff]   ;;  %v767_v39 = vld [vmem:[#allocation10 + $0x28] sm:$0xff]  }
  0x64   :  { %653 = vmatpush3.bf16.msra.mxu0 %v740_v3  ;;  %673 = vmatpush3.bf16.msra.mxu1 %v748_v8  ;;  %v584_v40 = vld [vmem:[%s1114_s4] ss:$0 sm:$0xff]  ;;  %v768_v48 = vld [vmem:[#allocation10 + $0x30] sm:$0xff]  }
  0x65   :  { %654 = vmatprep.subr.bf16.mxu0 %v921_v0  ;;  %674 = vmatprep.subr.bf16.mxu1 %v921_v0  ;;  %v769_v49 = vld [vmem:[#allocation10 + $0x38] sm:$0xff]  }
  0x66   :  { %v593_v50 = vld [vmem:[%s1116_s6] ss:$0 sm:$0xff]  ;;  %s923_s6 = smov [#allocation11]  }
  0x67   :  { %v602_v58 = vld [vmem:[%s1118_s8] ss:$0 sm:$0xff]  ;;  %s564_s11 = sshll.u32 %s923_s6, 4  ;;  %s565_s11 = int_to_ptr.vmem [resolvable:$true] %s564_s11 }
  0x68   :  { %655 = vmatpush3.bf16.msra.mxu0 %v741_v5  ;;  %675 = vmatpush3.bf16.msra.mxu1 %v749_v10  ;;  %s884_s12 = scalar_lea.vmem %s565_s11, 128  ;;  %p889_p13 = scmp.lt.s32.totalorder %s565_s11, %s565_s11 }
  0x69   :  { %656 = vmatprep.subr.bf16.mxu0 %v921_v0  ;;  %676 = vmatprep.subr.bf16.mxu1 %v921_v0  ;;  %p885_p12 = scmp.ne.s32.totalorder %s565_s11, %s884_s12  ;;  %p890_p0 = scmp.lt.s32.totalorder %s884_s12, %s884_s12 }
  0x6b   :  { %p891_p1 = por %p890_p0, %p889_p13 }
  0x6c   :  { %657 = vmatpush3.bf16.msra.mxu0 %v742_v7  ;;  %677 = vmatpush3.bf16.msra.mxu1 %v750_v12 }
  0x6d   :  { %658 = vmatprep.subr.bf16.mxu0 %v921_v0  ;;  %678 = vmatprep.subr.bf16.mxu1 %v921_v0  ;;  %p892_p2 = pnand %p891_p1, %p885_p12 }
  0x70   :  { %659 = vmatpush3.bf16.msra.mxu0 %v743_v9  ;;  %679 = vmatpush3.bf16.msra.mxu1 %v751_v14 }
  0x71   :  { %660 = vmatprep.subr.bf16.mxu0 %v921_v0  ;;  %680 = vmatprep.subr.bf16.mxu1 %v921_v0 }
  0x74   :  { %661 = vmatpush3.bf16.msra.mxu0 %v744_v11  ;;  %681 = vmatpush3.bf16.msra.mxu1 %v752_v16 }
  0x75   :  { %662 = vmatprep.subr.bf16.mxu0 %v921_v0  ;;  %682 = vmatprep.subr.bf16.mxu1 %v921_v0 }
  0x78   :  { %663 = vmatpush3.bf16.msra.mxu0 %v745_v13  ;;  %683 = vmatpush3.bf16.msra.mxu1 %v753_v17 }
  0x79   :  { %688 = vmatprep.subr.bf16.mxu0 %v921_v0  ;;  %708 = vmatprep.subr.bf16.mxu1 %v921_v0 }
  0x7b   :  { %665 = vmatmul.mubr.bf16.vlgmr.msra.gmra.mrb[0].mxu0 %v100_v15 }
  0x7c   :  { %704 = vmatprep.mubr.msk.bf16.mxu0 %vm922_vm0, %v921_v0  ;;  %689 = vmatpush3.bf16.msra.mxu0 %v754_v18 }
  0x7d   :  { %690 = vmatprep.subr.bf16.mxu0 %v921_v0 }
  0x80   :  { %691 = vmatpush3.bf16.msra.mxu0 %v755_v19 }
  0x81   :  { %692 = vmatprep.subr.bf16.mxu0 %v921_v0 }
  0x84   :  { %693 = vmatpush3.bf16.msra.mxu0 %v756_v20 }
  0x85   :  { %694 = vmatprep.subr.bf16.mxu0 %v921_v0 }
  0x88   :  { %695 = vmatpush3.bf16.msra.mxu0 %v757_v21 }
  0x89   :  { %696 = vmatprep.subr.bf16.mxu0 %v921_v0 }
  0x8c   :  { %697 = vmatpush3.bf16.msra.mxu0 %v758_v22 }
  0x8d   :  { %698 = vmatprep.subr.bf16.mxu0 %v921_v0 }
  0x90   :  { %699 = vmatpush3.bf16.msra.mxu0 %v759_v23 }
  0x91   :  { %700 = vmatprep.subr.bf16.mxu0 %v921_v0 }
  0x94   :  { %701 = vmatpush3.bf16.msra.mxu0 %v760_v32 }
  0x95   :  { %702 = vmatprep.subr.bf16.mxu0 %v921_v0 }
  0x98   :  { %703 = vmatpush3.bf16.msra.mxu0 %v761_v33 }
 0x14e   :  { %v206_v25 = vpop.f32.mrb[0].mxu0 }
 0x14f   :  { %v207_v26 = vadd.f32 %v575_v24, %v206_v25  ;;  %v666_v27 = vpop.f32.mrb[1].mxu0 }
 0x150   :  { %v209_v28 = vpop.f32.mrb[2].mxu0 }
 0x151   :  { %v212_v29 = vmax.f32 %v207_v26, 0.0  ;;  %v667_v30 = vpop.f32.mrb[3].mxu0 }
 0x153   :  { %v213_v31 = vpack.c.bf16 %v212_v29, %v212_v29 }
 0x155   :  { %685 = vmatmul.mubr.bf16.vlgmr.msra.gmra.mrb[0].mxu1 %v213_v31 }
 0x156   :  { %724 = vmatprep.mubr.msk.bf16.mxu1 %vm922_vm0, %v921_v0  ;;  %709 = vmatpush3.bf16.msra.mxu1 %v762_v34 }
 0x157   :  { %710 = vmatprep.subr.bf16.mxu1 %v921_v0 }
 0x15a   :  { %711 = vmatpush3.bf16.msra.mxu1 %v763_v35 }
 0x15b   :  { %712 = vmatprep.subr.bf16.mxu1 %v921_v0 }
 0x15e   :  { %713 = vmatpush3.bf16.msra.mxu1 %v764_v36 }
 0x15f   :  { %714 = vmatprep.subr.bf16.mxu1 %v921_v0 }
 0x162   :  { %715 = vmatpush3.bf16.msra.mxu1 %v765_v37 }
 0x163   :  { %716 = vmatprep.subr.bf16.mxu1 %v921_v0 }
 0x166   :  { %717 = vmatpush3.bf16.msra.mxu1 %v766_v38 }
 0x167   :  { %718 = vmatprep.subr.bf16.mxu1 %v921_v0 }
 0x16a   :  { %719 = vmatpush3.bf16.msra.mxu1 %v767_v39 }
 0x16b   :  { %720 = vmatprep.subr.bf16.mxu1 %v921_v0 }
 0x16e   :  { %721 = vmatpush3.bf16.msra.mxu1 %v768_v48 }
 0x16f   :  { %722 = vmatprep.subr.bf16.mxu1 %v921_v0 }
 0x172   :  { %723 = vmatpush3.bf16.msra.mxu1 %v769_v49 }
 0x228   :  { %v319_v41 = vpop.f32.mrb[0].mxu1 }
 0x229   :  { %v320_v42 = vadd.f32 %v584_v40, %v319_v41  ;;  %v686_v43 = vpop.f32.mrb[1].mxu1 }
 0x22a   :  { %v322_v44 = vpop.f32.mrb[2].mxu1 }
 0x22b   :  { %v325_v45 = vmax.f32 %v320_v42, 0.0  ;;  %v687_v46 = vpop.f32.mrb[3].mxu1 }
 0x22d   :  { %v326_v47 = vpack.c.bf16 %v325_v45, %v325_v45 }
 0x22f   :  { %705 = vmatmul.mubr.bf16.vlgmr.msra.gmra.mrb[4].mxu0 %v326_v47 }
 0x302   :  { %v432_v51 = vpop.f32.mrb[4].mxu0 }
 0x303   :  { %v433_v52 = vadd.f32 %v593_v50, %v432_v51  ;;  %v706_v53 = vpop.f32.mrb[5].mxu0 }
 0x304   :  { %v435_v54 = vpop.f32.mrb[6].mxu0 }
 0x305   :  { %v438_v55 = vmax.f32 %v433_v52, 0.0  ;;  %v707_v56 = vpop.f32.mrb[7].mxu0 }
 0x307   :  { %v439_v57 = vpack.c.bf16 %v438_v55, %v438_v55 }
 0x309   :  { %725 = vmatmul.mubr.bf16.vlgmr.msra.gmra.mrb[4].mxu1 %v439_v57 }
 0x3dc   :  { %v545_v59 = vpop.f32.mrb[4].mxu1 }
 0x3dd   :  { %v546_v60 = vadd.f32 %v602_v58, %v545_v59  ;;  %v726_v61 = vpop.f32.mrb[5].mxu1 }
 0x3de   :  { %v548_v62 = vpop.f32.mrb[6].mxu1 }
 0x3df   :  { %v611_v63 = vmul.f32 -1.442695, %v546_v60  ;;  %v727_v0 = vpop.f32.mrb[7].mxu1 }
 0x3e1   :  { %770 = vpow2.f32 %v611_v63 }
 0x3eb   :  { %v771_v1 = vpop.eup %770 }
 0x3ec   :  { %v554_v2 = vadd.f32 1.0, %v771_v1 }
 0x3ee   :  { %772 = vrcp.f32 %v554_v2 }
 0x3f8   :  { %v773_v3 = vpop.eup %772 }
 0x3f9   :  { %557 = vst [vmem:[#allocation11] sm:$0xff] %v773_v3 }
 0x3fa   :  { %895 = shalt.err (!%p892_p2)
}
 0x3fb   :  { %s896_s1 = scalar_lea.hbm %s1119_s9, 128 }
 0x3fc   :  { %p897_p3 = scmp.ne.s32.totalorder %s1119_s9, %s896_s1  ;;  %p900_p4 = scmp.lt.u32.totalorder %s896_s1, %s1119_s9 }
 0x3fe   :  { %p902_p5 = pnand %p900_p4, %p897_p3 }
 0x400   :  { %905 = shalt.err (!%p902_p5)
}
 0x401   :  { %567 = dma.vmem_to_hbm [thread:$0]  %s565_s11, 128, %s1119_s9, [#allocation4]  }
 0x402   :  { %912 = dma.done.wait [#allocation4], 128  }
 0x403   :  { %913 = vsyncadd [#allocation4], 4294967168 }
 0x404   :  { %571 = vsyncpa [#allocation3], 1 }
 0x405   :  { %572 = vsyncpa [#allocation6], 1 }
 0x406   :  { %573 = vsyncpa [#allocation9], 1 }
 0x407   :  { %574 = vsyncpa [#allocation4], 1 }

</bundles_post_ra>
